<compile_context>
chip_gen: v7x
topology: tpu7x:2x2x1
jax: 0.10.0
libtpu: 0.0.40
codegen_flags: <defaults>
</compile_context>

<pallas_src>
import functools

import jax
import jax.numpy as jnp
from jax.experimental import pallas as pl
from jax.experimental.pallas import tpu as pltpu

LANE = 128  # hidden/output feature dims are padded to one full lane width


def dqn_kernel(x_ref,
               w1_ref, b1_ref,
               w2_ref, b2_ref,
               w3_ref, b3_ref,
               w4_ref, b4_ref,
               o_ref):
    # x tile: (tile_b, n_in) f32; w1: (n_in, 128) bf16; w2..w4: (128, 128) bf16;
    # biases: (1, 128) f32.  bf16 into the MXU, f32 accumulation, f32 elementwise.
    x = x_ref[...].astype(jnp.bfloat16)

    h = jnp.dot(x, w1_ref[...], preferred_element_type=jnp.float32) + b1_ref[...]
    h = jnp.maximum(h, 0.0)

    h = jnp.dot(h.astype(jnp.bfloat16), w2_ref[...],
                preferred_element_type=jnp.float32) + b2_ref[...]
    h = jnp.maximum(h, 0.0)

    h = jnp.dot(h.astype(jnp.bfloat16), w3_ref[...],
                preferred_element_type=jnp.float32) + b3_ref[...]
    h = jnp.maximum(h, 0.0)

    out = jnp.dot(h.astype(jnp.bfloat16), w4_ref[...],
                  preferred_element_type=jnp.float32) + b4_ref[...]
    # Output block is (tile_b, 128) bf16: lane-dense, unmasked stores.
    o_ref[...] = out.astype(o_ref.dtype)


def _round_up(v, m):
    return ((v + m - 1) // m) * m


def _pad2(a, rows, cols):
    return jnp.pad(a, ((0, rows - a.shape[0]), (0, cols - a.shape[1])))


def prepare_params(params):
    """Pad weights/biases ONCE, outside the hot path.
    w1 keeps its natural K dim (n_in) and pads only N -> 128; w2..w4 pad to
    (128, 128).  Padded rows/cols are exact zeros, so padded lanes carry exact
    zeros through every layer (ReLU(0 + 0) == 0)."""
    n_in = params["w1"].shape[0]
    prepared = {
        "w1": _pad2(params["w1"], n_in, LANE).astype(jnp.bfloat16),
        "b1": _pad2(params["b1"], 1, LANE).astype(jnp.float32),
    }
    for i in range(2, 5):
        prepared[f"w{i}"] = _pad2(params[f"w{i}"], LANE, LANE).astype(jnp.bfloat16)
        prepared[f"b{i}"] = _pad2(params[f"b{i}"], 1, LANE).astype(jnp.float32)
    return prepared


@functools.partial(jax.jit, static_argnums=(2,))
def dqn_forward(x, prepared, n_out):
    """x: (B, n_in) float; prepared: output of prepare_params; returns (B, n_out) f32."""
    B, n_in = x.shape

    # Batch tiling:
    #  - B <= 256: single block (fast path; floor of 16 rows so bf16 intermediates
    #    meet the (16,128) bf16 tile and avoid packing relayouts).
    #  - 256 < B <= 4096: exactly >=2 grid steps so v7x's two TensorCores both work.
    #  - B > 4096: 2048-row tiles (large enough to amortize ~0.35us/step overhead,
    #    small enough to leave ample VMEM headroom on v7x's 64 MiB).
    if B <= 256:
        tile_b = max(16, _round_up(B, 8))
    elif B <= 4096:
        tile_b = _round_up(pl.cdiv(B, 2), 8)
    else:
        tile_b = 2048
    b_pad = _round_up(B, tile_b)
    grid = (pl.cdiv(b_pad, tile_b),)

    x = x.astype(jnp.float32)
    x_pad = x if b_pad == B else jnp.pad(x, ((0, b_pad - B), (0, 0)))

    # x at natural width: last block dim equals the full array dim (allowed).
    x_spec = pl.BlockSpec((tile_b, n_in), lambda i: (i, 0))
    w1_spec = pl.BlockSpec((n_in, LANE), lambda i: (0, 0))   # resident across grid
    w_spec = pl.BlockSpec((LANE, LANE), lambda i: (0, 0))    # resident across grid
    b_spec = pl.BlockSpec((1, LANE), lambda i: (0, 0))       # resident across grid
    o_spec = pl.BlockSpec((tile_b, LANE), lambda i: (i, 0))

    flops = 2 * b_pad * (n_in * LANE + 3 * LANE * LANE)
    bytes_accessed = (b_pad * n_in * 4                      # x (natural width, f32)
                      + (n_in * LANE + 3 * LANE * LANE) * 2  # weights (bf16)
                      + 4 * LANE * 4                         # biases (f32)
                      + b_pad * LANE * 2)                    # output (bf16)

    out_pad = pl.pallas_call(
        dqn_kernel,
        out_shape=jax.ShapeDtypeStruct((b_pad, LANE), jnp.bfloat16),
        grid=grid,
        in_specs=[x_spec,
                  w1_spec, b_spec,
                  w_spec, b_spec,
                  w_spec, b_spec,
                  w_spec, b_spec],
        out_specs=o_spec,
        compiler_params=pltpu.CompilerParams(
            dimension_semantics=("parallel",)),
        cost_estimate=pl.CostEstimate(
            flops=flops, transcendentals=0, bytes_accessed=bytes_accessed),
    )(x_pad,
      prepared["w1"], prepared["b1"],
      prepared["w2"], prepared["b2"],
      prepared["w3"], prepared["b3"],
      prepared["w4"], prepared["b4"])

    # Slice padded rows / lanes away and up-cast in the wrapper (never in-kernel).
    return out_pad[:B, :n_out].astype(jnp.float32)


def init_params(key, n_in, n_out):
    """PyTorch-nn.Linear-style init (uniform +/- 1/sqrt(fan_in)).
    Weights stored (in_features, out_features) so each layer is y = x @ W + b."""
    dims = [(n_in, 32), (32, 32), (32, 32), (32, n_out)]
    params = {}
    for i, (fan_in, fan_out) in enumerate(dims, start=1):
        key, kw, kb = jax.random.split(key, 3)
        bound = 1.0 / (fan_in ** 0.5)
        params[f"w{i}"] = jax.random.uniform(
            kw, (fan_in, fan_out), jnp.float32, -bound, bound)
        params[f"b{i}"] = jax.random.uniform(
            kb, (1, fan_out), jnp.float32, -bound, bound)
    return params


def dqn_reference(x, p, bf16_matmul=True):
    """Plain-JAX reference. bf16_matmul=True mirrors the kernel's MXU precision."""
    def dense(a, w, b):
        if bf16_matmul:
            a = a.astype(jnp.bfloat16)
            w = w.astype(jnp.bfloat16)
        return jnp.dot(a, w, preferred_element_type=jnp.float32) + b
    h = jnp.maximum(dense(x, p["w1"], p["b1"]), 0.0)
    h = jnp.maximum(dense(h, p["w2"], p["b2"]), 0.0)
    h = jnp.maximum(dense(h, p["w3"], p["b3"]), 0.0)
    return dense(h, p["w4"], p["b4"])


if __name__ == "__main__":
    B, N_IN, N_OUT = 8, 16, 4  # small shapes consistent with DQN(n_in=16, n_out=4)

    key = jax.random.PRNGKey(0)
    key, kx = jax.random.split(key)
    x = jax.random.normal(kx, (B, N_IN), jnp.float32)
    params = init_params(key, N_IN, N_OUT)
    prepared = prepare_params(params)  # pad + cast once, outside the hot path

    out = dqn_forward(x, prepared, N_OUT)
    out = jax.block_until_ready(out)

    assert out.shape == (B, N_OUT)
    assert bool(jnp.all(jnp.isfinite(out)))

    # Kernel output is bf16-rounded on store; compare against the bf16-MXU ref
    # with tolerance covering one bf16 ulp, plus a loose f32 sanity check.
    ref_bf16 = dqn_reference(x, params, bf16_matmul=True)
    ref_f32 = dqn_reference(x, params, bf16_matmul=False)
    assert jnp.allclose(out, ref_bf16, atol=5e-3, rtol=5e-3), "mismatch vs bf16 ref"
    assert jnp.allclose(out, ref_f32, atol=1e-1, rtol=1e-1), "mismatch vs f32 ref"

    print("KERNEL_OK")
</pallas_src>

<mosaic_0001>
module attributes {stable_mosaic.version = 11 : i64} {
  func.func @dqn_kernel(%arg0: i32, %arg1: memref<16x16xf32, #tpu.memory_space<vmem>>, %arg2: memref<16x128xbf16, #tpu.memory_space<vmem>>, %arg3: memref<1x128xf32, #tpu.memory_space<vmem>>, %arg4: memref<128x128xbf16, #tpu.memory_space<vmem>>, %arg5: memref<1x128xf32, #tpu.memory_space<vmem>>, %arg6: memref<128x128xbf16, #tpu.memory_space<vmem>>, %arg7: memref<1x128xf32, #tpu.memory_space<vmem>>, %arg8: memref<128x128xbf16, #tpu.memory_space<vmem>>, %arg9: memref<1x128xf32, #tpu.memory_space<vmem>>, %arg10: memref<16x128xbf16, #tpu.memory_space<vmem>>) attributes {dimension_semantics = [#tpu.dimension_semantics<parallel>], iteration_bounds = array<i64: 1>, scalar_prefetch = 0 : i64, scratch_operands = 0 : i64, tpu.core_type = #tpu.core_type<tc>, window_params = [{transform_indices = @transform_0, window_bounds = array<i64: 16, 16>}, {pipeline_mode = #tpu.pipeline_mode<synchronous>, transform_indices = @transform_1, window_bounds = array<i64: 16, 128>}, {pipeline_mode = #tpu.pipeline_mode<synchronous>, transform_indices = @transform_2, window_bounds = array<i64: 1, 128>}, {pipeline_mode = #tpu.pipeline_mode<synchronous>, transform_indices = @transform_3, window_bounds = array<i64: 128, 128>}, {pipeline_mode = #tpu.pipeline_mode<synchronous>, transform_indices = @transform_4, window_bounds = array<i64: 1, 128>}, {pipeline_mode = #tpu.pipeline_mode<synchronous>, transform_indices = @transform_5, window_bounds = array<i64: 128, 128>}, {pipeline_mode = #tpu.pipeline_mode<synchronous>, transform_indices = @transform_6, window_bounds = array<i64: 1, 128>}, {pipeline_mode = #tpu.pipeline_mode<synchronous>, transform_indices = @transform_7, window_bounds = array<i64: 128, 128>}, {pipeline_mode = #tpu.pipeline_mode<synchronous>, transform_indices = @transform_8, window_bounds = array<i64: 1, 128>}, {transform_indices = @transform_9, window_bounds = array<i64: 16, 128>}]} {
    %c0 = arith.constant 0 : index
    %c0_0 = arith.constant 0 : index
    %0 = vector.load %arg1[%c0, %c0_0] : memref<16x16xf32, #tpu.memory_space<vmem>>, vector<16x16xf32>
    %1 = arith.truncf %0 : vector<16x16xf32> to vector<16x16xbf16>
    %c0_1 = arith.constant 0 : index
    %c0_2 = arith.constant 0 : index
    %2 = vector.load %arg2[%c0_1, %c0_2] : memref<16x128xbf16, #tpu.memory_space<vmem>>, vector<16x128xbf16>
    %cst = arith.constant dense<0.000000e+00> : vector<16x128xf32>
    %3 = tpu.matmul %1, %2, %cst {dimension_numbers = #tpu.dot_dimension_numbers<[1], [0], [0], [1], [0, 0, 1, 1], [], []>} : vector<16x16xbf16>, vector<16x128xbf16>, vector<16x128xf32> -> vector<16x128xf32>
    %c0_3 = arith.constant 0 : index
    %c0_4 = arith.constant 0 : index
    %4 = vector.load %arg3[%c0_3, %c0_4] : memref<1x128xf32, #tpu.memory_space<vmem>>, vector<1x128xf32>
    %5 = vector.broadcast %4 : vector<1x128xf32> to vector<16x128xf32>
    %6 = arith.addf %3, %5 : vector<16x128xf32>
    %cst_5 = arith.constant 0.000000e+00 : f32
    %7 = vector.broadcast %cst_5 : f32 to vector<16x128xf32>
    %8 = arith.maximumf %6, %7 : vector<16x128xf32>
    %9 = arith.truncf %8 : vector<16x128xf32> to vector<16x128xbf16>
    %c0_6 = arith.constant 0 : index
    %c0_7 = arith.constant 0 : index
    %10 = vector.load %arg4[%c0_6, %c0_7] : memref<128x128xbf16, #tpu.memory_space<vmem>>, vector<128x128xbf16>
    %cst_8 = arith.constant dense<0.000000e+00> : vector<16x128xf32>
    %11 = tpu.matmul %9, %10, %cst_8 {dimension_numbers = #tpu.dot_dimension_numbers<[1], [0], [0], [1], [0, 0, 1, 1], [], []>} : vector<16x128xbf16>, vector<128x128xbf16>, vector<16x128xf32> -> vector<16x128xf32>
    %c0_9 = arith.constant 0 : index
    %c0_10 = arith.constant 0 : index
    %12 = vector.load %arg5[%c0_9, %c0_10] : memref<1x128xf32, #tpu.memory_space<vmem>>, vector<1x128xf32>
    %13 = vector.broadcast %12 : vector<1x128xf32> to vector<16x128xf32>
    %14 = arith.addf %11, %13 : vector<16x128xf32>
    %cst_11 = arith.constant 0.000000e+00 : f32
    %15 = vector.broadcast %cst_11 : f32 to vector<16x128xf32>
    %16 = arith.maximumf %14, %15 : vector<16x128xf32>
    %17 = arith.truncf %16 : vector<16x128xf32> to vector<16x128xbf16>
    %c0_12 = arith.constant 0 : index
    %c0_13 = arith.constant 0 : index
    %18 = vector.load %arg6[%c0_12, %c0_13] : memref<128x128xbf16, #tpu.memory_space<vmem>>, vector<128x128xbf16>
    %cst_14 = arith.constant dense<0.000000e+00> : vector<16x128xf32>
    %19 = tpu.matmul %17, %18, %cst_14 {dimension_numbers = #tpu.dot_dimension_numbers<[1], [0], [0], [1], [0, 0, 1, 1], [], []>} : vector<16x128xbf16>, vector<128x128xbf16>, vector<16x128xf32> -> vector<16x128xf32>
    %c0_15 = arith.constant 0 : index
    %c0_16 = arith.constant 0 : index
    %20 = vector.load %arg7[%c0_15, %c0_16] : memref<1x128xf32, #tpu.memory_space<vmem>>, vector<1x128xf32>
    %21 = vector.broadcast %20 : vector<1x128xf32> to vector<16x128xf32>
    %22 = arith.addf %19, %21 : vector<16x128xf32>
    %cst_17 = arith.constant 0.000000e+00 : f32
    %23 = vector.broadcast %cst_17 : f32 to vector<16x128xf32>
    %24 = arith.maximumf %22, %23 : vector<16x128xf32>
    %25 = arith.truncf %24 : vector<16x128xf32> to vector<16x128xbf16>
    %c0_18 = arith.constant 0 : index
    %c0_19 = arith.constant 0 : index
    %26 = vector.load %arg8[%c0_18, %c0_19] : memref<128x128xbf16, #tpu.memory_space<vmem>>, vector<128x128xbf16>
    %cst_20 = arith.constant dense<0.000000e+00> : vector<16x128xf32>
    %27 = tpu.matmul %25, %26, %cst_20 {dimension_numbers = #tpu.dot_dimension_numbers<[1], [0], [0], [1], [0, 0, 1, 1], [], []>} : vector<16x128xbf16>, vector<128x128xbf16>, vector<16x128xf32> -> vector<16x128xf32>
    %c0_21 = arith.constant 0 : index
    %c0_22 = arith.constant 0 : index
    %28 = vector.load %arg9[%c0_21, %c0_22] : memref<1x128xf32, #tpu.memory_space<vmem>>, vector<1x128xf32>
    %29 = vector.broadcast %28 : vector<1x128xf32> to vector<16x128xf32>
    %30 = arith.addf %27, %29 : vector<16x128xf32>
    %31 = arith.truncf %30 : vector<16x128xf32> to vector<16x128xbf16>
    %c0_23 = arith.constant 0 : index
    %c0_24 = arith.constant 0 : index
    %32 = vector.load %arg10[%c0_23, %c0_24] : memref<16x128xbf16, #tpu.memory_space<vmem>>, vector<16x128xbf16>
    tpu.vector_store %arg10[%c0_23, %c0_24], %31 {strides = array<i32>} : memref<16x128xbf16, #tpu.memory_space<vmem>>, vector<16x128xbf16>,
    return
  }
  func.func @transform_0(%arg0: i32) -> (i32, i32) {
    %c0_i32 = arith.constant 0 : i32
    %c0_i32_0 = arith.constant 0 : i32
    return %arg0, %c0_i32 : i32, i32
  }
  func.func @transform_1(%arg0: i32) -> (i32, i32) {
    %c0_i32 = arith.constant 0 : i32
    %c0_i32_0 = arith.constant 0 : i32
    %c0_i32_1 = arith.constant 0 : i32
    return %c0_i32, %c0_i32_0 : i32, i32
  }
  func.func @transform_2(%arg0: i32) -> (i32, i32) {
    %c0_i32 = arith.constant 0 : i32
    %c0_i32_0 = arith.constant 0 : i32
    %c0_i32_1 = arith.constant 0 : i32
    return %c0_i32, %c0_i32_0 : i32, i32
  }
  func.func @transform_3(%arg0: i32) -> (i32, i32) {
    %c0_i32 = arith.constant 0 : i32
    %c0_i32_0 = arith.constant 0 : i32
    %c0_i32_1 = arith.constant 0 : i32
    return %c0_i32, %c0_i32_0 : i32, i32
  }
  func.func @transform_4(%arg0: i32) -> (i32, i32) {
    %c0_i32 = arith.constant 0 : i32
    %c0_i32_0 = arith.constant 0 : i32
    %c0_i32_1 = arith.constant 0 : i32
    return %c0_i32, %c0_i32_0 : i32, i32
  }
  func.func @transform_5(%arg0: i32) -> (i32, i32) {
    %c0_i32 = arith.constant 0 : i32
    %c0_i32_0 = arith.constant 0 : i32
    %c0_i32_1 = arith.constant 0 : i32
    return %c0_i32, %c0_i32_0 : i32, i32
  }
  func.func @transform_6(%arg0: i32) -> (i32, i32) {
    %c0_i32 = arith.constant 0 : i32
    %c0_i32_0 = arith.constant 0 : i32
    %c0_i32_1 = arith.constant 0 : i32
    return %c0_i32, %c0_i32_0 : i32, i32
  }
  func.func @transform_7(%arg0: i32) -> (i32, i32) {
    %c0_i32 = arith.constant 0 : i32
    %c0_i32_0 = arith.constant 0 : i32
    %c0_i32_1 = arith.constant 0 : i32
    return %c0_i32, %c0_i32_0 : i32, i32
  }
  func.func @transform_8(%arg0: i32) -> (i32, i32) {
    %c0_i32 = arith.constant 0 : i32
    %c0_i32_0 = arith.constant 0 : i32
    %c0_i32_1 = arith.constant 0 : i32
    return %c0_i32, %c0_i32_0 : i32, i32
  }
  func.func @transform_9(%arg0: i32) -> (i32, i32) {
    %c0_i32 = arith.constant 0 : i32
    %c0_i32_0 = arith.constant 0 : i32
    return %arg0, %c0_i32 : i32, i32
  }
}

</mosaic_0001>

<bundles_post_ra>
// kernel: dqn_forward.1
= control target key start
LH: loop header
LB: loop body
LE: loop exit
PB: predicated region body
PF: predicated region fallthrough
CT: control target
= control target key end

     0   :  { %14 = vsyncpa [#allocation3], 0  ;;  %s900_s0 = inlined_call_operand.vmem [shape: f32[16,16], index: 0, kind: input, shape index: {}]   ;;  %s901_s1 = inlined_call_operand.vmem [shape: bf16[16,128], index: 1, kind: input, shape index: {}]   ;;  %s902_s2 = inlined_call_operand.vmem [shape: f32[1,128], index: 2, kind: input, shape index: {}]   ;;  %s903_s3 = inlined_call_operand.hbm [shape: bf16[128,128], index: 3, kind: input, shape index: {}]   ;;  %s904_s4 = inlined_call_operand.vmem [shape: f32[1,128], index: 4, kind: input, shape index: {}]   ;;  %s905_s5 = inlined_call_operand.hbm [shape: bf16[128,128], index: 5, kind: input, shape index: {}]   ;;  %s906_s6 = inlined_call_operand.vmem [shape: f32[1,128], index: 6, kind: input, shape index: {}]   ;;  %s907_s7 = inlined_call_operand.hbm [shape: bf16[128,128], index: 7, kind: input, shape index: {}]   ;;  %s908_s8 = inlined_call_operand.vmem [shape: f32[1,128], index: 8, kind: input, shape index: {}]   ;;  %s909_s9 = inlined_call_operand.vmem [shape: bf16[16,128], index: 9, kind: output, shape index: {}]  }
   0x1   :  { %15 = vsyncpa [#allocation5], 0  ;;  %s734_s30 = smov [#allocation4]   ;;  %s735_s11 = smov [#allocation2]  }
   0x2   :  { %s41_s10 = sshll.u32 %s734_s30, 4  ;;  %s27_s12 = sshll.u32 %s735_s11, 4  ;;  %s42_s10 = int_to_ptr.vmem [resolvable:$true] %s41_s10  ;;  %s791_s12 = int_to_ptr.vmem [resolvable:$true] %s27_s12 }
   0x3   :  { %s664_s15 = scalar_lea.hbm %s905_s5, 1024 }
   0x4   :  { %p665_p0 = scmp.ne.s32.totalorder %s905_s5, %s664_s15  ;;  %p668_p1 = scmp.lt.u32.totalorder %s664_s15, %s905_s5 }
   0x6   :  { %p670_p2 = pnand %p668_p1, %p665_p0 }
   0x8   :  { %673 = shalt.err (!%p670_p2)
}
   0x9   :  { %s674_s20 = scalar_lea.vmem %s42_s10, 1024  ;;  %p679_p4 = scmp.lt.s32.totalorder %s42_s10, %s42_s10 }
   0xa   :  { %p675_p3 = scmp.ne.s32.totalorder %s42_s10, %s674_s20  ;;  %p680_p5 = scmp.lt.s32.totalorder %s674_s20, %s674_s20 }
   0xc   :  { %p681_p6 = por %p680_p5, %p679_p4 }
   0xe   :  { %p682_p7 = pnand %p681_p6, %p675_p3 }
  0x10   :  { %685 = shalt.err (!%p682_p7)
}
  0x11   :  { %s736_s21 = smov 64   ;;  %s737_s22 = smov 4  }
  0x12   :  { %47 = dma.hbm_to_vmem [thread:$0]  %s905_s5, 1024, %s42_s10, [#allocation5], %s736_s21, %s736_s21, %s737_s22  }
  0x13   :  { %s686_s27 = scalar_lea.hbm %s903_s3, 1024 }
  0x14   :  { %p687_p8 = scmp.ne.s32.totalorder %s903_s3, %s686_s27  ;;  %p690_p9 = scmp.lt.u32.totalorder %s686_s27, %s903_s3 }
  0x16   :  { %p692_p10 = pnand %p690_p9, %p687_p8 }
  0x18   :  { %695 = shalt.err (!%p692_p10)
}
  0x19   :  { %s696_s13 = scalar_lea.vmem %s791_s12, 1024  ;;  %p701_p12 = scmp.lt.s32.totalorder %s791_s12, %s791_s12 }
  0x1a   :  { %p697_p11 = scmp.ne.s32.totalorder %s791_s12, %s696_s13  ;;  %p702_p13 = scmp.lt.s32.totalorder %s696_s13, %s696_s13 }
  0x1c   :  { %p703_p0 = por %p702_p13, %p701_p12 }
  0x1e   :  { %p704_p1 = pnand %p703_p0, %p697_p11 }
  0x20   :  { %707 = shalt.err (!%p704_p1)
}
  0x21   :  { %33 = dma.hbm_to_vmem [thread:$0]  %s903_s3, 1024, %s791_s12, [#allocation3], %s736_s21, %s736_s21, %s737_s22  }
  0x22   :  { %s738_s14 = smov [#allocation6]   ;;  %s708_s18 = scalar_lea.hbm %s907_s7, 1024 }
  0x23   :  { %s55_s15 = sshll.u32 %s738_s14, 4  ;;  %p709_p2 = scmp.ne.s32.totalorder %s907_s7, %s708_s18  ;;  %s56_s15 = int_to_ptr.vmem [resolvable:$true] %s55_s15 }
  0x24   :  { %p712_p3 = scmp.lt.u32.totalorder %s708_s18, %s907_s7 }
  0x26   :  { %p714_p4 = pnand %p712_p3, %p709_p2 }
  0x28   :  { %717 = shalt.err (!%p714_p4)
}
  0x29   :  { %s718_s25 = scalar_lea.vmem %s56_s15, 1024  ;;  %p723_p6 = scmp.lt.s32.totalorder %s56_s15, %s56_s15 }
  0x2a   :  { %p719_p5 = scmp.ne.s32.totalorder %s56_s15, %s718_s25  ;;  %p724_p7 = scmp.lt.s32.totalorder %s718_s25, %s718_s25 }
  0x2c   :  { %p725_p8 = por %p724_p7, %p723_p6 }
  0x2e   :  { %p726_p9 = pnand %p725_p8, %p719_p5 }
  0x30   :  { %729 = shalt.err (!%p726_p9)
}
  0x31   :  { %61 = dma.hbm_to_vmem [thread:$0]  %s907_s7, 1024, %s56_s15, [#allocation5], %s736_s21, %s736_s21, %s737_s22  }
  0x32   :  { %730 = dma.done.wait [#allocation3], 1024  }
  0x33   :  { %731 = vsyncadd [#allocation3], 4294966272 }
  0x34   :  { %732 = dma.done.wait [#allocation5], 2048  }
  0x35   :  { %733 = vsyncadd [#allocation5], 4294965248  ;;  %v739_v0 = vmov 0.0   ;;  %vm740_vm0 = vmmov 0   ;;  %v639_v1 = vld [vmem:[%s901_s1] sm:$0xff]   ;;  %v75_v3 = vld [vmem:[%s900_s0 + $0x8] sm:$0xff] }
  0x36   :  { %566 = vmatprep.subr.bf16.mxu0 %v739_v0  ;;  %568 = vmatprep.mubr.msk.bf16.mxu0 %vm740_vm0, %v739_v0  ;;  %v74_v2 = vld [vmem:[%s900_s0] sm:$0xff]  ;;  %vm92_vm1 = vcmask 130048   ;;  %v641_v6 = vld [vmem:[#allocation2 + $0x8] sm:$0xff]   ;;  %v642_v7 = vld [vmem:[#allocation2 + $0x10] sm:$0xff]  }
  0x37   :  { %572 = vmatprep.subr.bf16.mxu1 %v739_v0  ;;  %588 = vmatprep.mubr.msk.bf16.mxu1 %vm740_vm0, %v739_v0  ;;  %v76_v4 = vpack.c.bf16 %v75_v3, %v74_v2  ;;  %v640_v5 = vld [vmem:[#allocation2] sm:$0xff]   ;;  %v643_v8 = vld [vmem:[#allocation2 + $0x18] sm:$0xff]   ;;  %v645_v10 = vld [vmem:[#allocation2 + $0x28] sm:$0xff]  }
  0x38   :  { %567 = vmatpush3.bf16.msra.mxu0 %v639_v1  ;;  %573 = vmatpush3.bf16.msra.mxu1 %v640_v5  ;;  %v644_v9 = vld [vmem:[#allocation2 + $0x20] sm:$0xff]   ;;  %v646_v11 = vld [vmem:[#allocation2 + $0x30] sm:$0xff]   ;;  %v647_v12 = vld [vmem:[#allocation2 + $0x38] sm:$0xff]  }
  0x39   :  { %592 = vmatprep.subr.bf16.mxu0 %v739_v0  ;;  %574 = vmatprep.subr.bf16.mxu1 %v739_v0  ;;  %v648_v13 = vld [vmem:[#allocation4] sm:$0xff]   ;;  %v649_v14 = vld [vmem:[#allocation4 + $0x8] sm:$0xff]   ;;  %v650_v15 = vld [vmem:[#allocation4 + $0x10] sm:$0xff]  }
  0x3a   :  { %v651_v16 = vld [vmem:[#allocation4 + $0x18] sm:$0xff]   ;;  %v652_v17 = vld [vmem:[#allocation4 + $0x20] sm:$0xff]   ;;  %v653_v18 = vld [vmem:[#allocation4 + $0x28] sm:$0xff]  }
  0x3b   :  { %569 = vmatmul.mubr.msk.bf16.vlgmr.msra.gmra.mrb[0].mxu0 %vm92_vm1, %v76_v4  ;;  %v498_v19 = vld [vmem:[%s902_s2] ss:$0 sm:$0xff]  ;;  %v654_v29 = vld [vmem:[#allocation4 + $0x30] sm:$0xff]   ;;  %v655_v30 = vld [vmem:[#allocation4 + $0x38] sm:$0xff]  }
  0x3c   :  { %608 = vmatprep.mubr.msk.bf16.mxu0 %vm740_vm0, %v739_v0  ;;  %575 = vmatpush3.bf16.msra.mxu1 %v641_v6  ;;  %v656_v31 = vld [vmem:[#allocation6] sm:$0xff]   ;;  %v657_v32 = vld [vmem:[#allocation6 + $0x8] sm:$0xff]   ;;  %v658_v33 = vld [vmem:[#allocation6 + $0x10] sm:$0xff]  }
  0x3d   :  { %576 = vmatprep.subr.bf16.mxu1 %v739_v0  ;;  %593 = vmatpush3.bf16.msra.mxu0 %v648_v13  ;;  %v659_v34 = vld [vmem:[#allocation6 + $0x18] sm:$0xff]   ;;  %v660_v35 = vld [vmem:[#allocation6 + $0x20] sm:$0xff]   ;;  %v661_v36 = vld [vmem:[#allocation6 + $0x28] sm:$0xff]  }
  0x3e   :  { %594 = vmatprep.subr.bf16.mxu0 %v739_v0  ;;  %v501_v37 = vld [vmem:[%s904_s4] ss:$0 sm:$0xff]  ;;  %v662_v47 = vld [vmem:[#allocation6 + $0x30] sm:$0xff]   ;;  %v663_v48 = vld [vmem:[#allocation6 + $0x38] sm:$0xff]  }
  0x3f   :  { %v510_v49 = vld [vmem:[%s906_s6] ss:$0 sm:$0xff] }
  0x40   :  { %577 = vmatpush3.bf16.msra.mxu1 %v642_v7  ;;  %v519_v59 = vld [vmem:[%s908_s8] ss:$0 sm:$0xff] }
  0x41   :  { %578 = vmatprep.subr.bf16.mxu1 %v739_v0  ;;  %595 = vmatpush3.bf16.msra.mxu0 %v649_v14 }
  0x42   :  { %596 = vmatprep.subr.bf16.mxu0 %v739_v0 }
  0x44   :  { %579 = vmatpush3.bf16.msra.mxu1 %v643_v8 }
  0x45   :  { %580 = vmatprep.subr.bf16.mxu1 %v739_v0  ;;  %597 = vmatpush3.bf16.msra.mxu0 %v650_v15 }
  0x46   :  { %598 = vmatprep.subr.bf16.mxu0 %v739_v0 }
  0x48   :  { %581 = vmatpush3.bf16.msra.mxu1 %v644_v9 }
  0x49   :  { %582 = vmatprep.subr.bf16.mxu1 %v739_v0  ;;  %599 = vmatpush3.bf16.msra.mxu0 %v651_v16 }
  0x4a   :  { %600 = vmatprep.subr.bf16.mxu0 %v739_v0 }
  0x4c   :  { %583 = vmatpush3.bf16.msra.mxu1 %v645_v10 }
  0x4d   :  { %584 = vmatprep.subr.bf16.mxu1 %v739_v0  ;;  %601 = vmatpush3.bf16.msra.mxu0 %v652_v17 }
  0x4e   :  { %602 = vmatprep.subr.bf16.mxu0 %v739_v0 }
  0x50   :  { %585 = vmatpush3.bf16.msra.mxu1 %v646_v11 }
  0x51   :  { %586 = vmatprep.subr.bf16.mxu1 %v739_v0  ;;  %603 = vmatpush3.bf16.msra.mxu0 %v653_v18 }
  0x52   :  { %604 = vmatprep.subr.bf16.mxu0 %v739_v0 }
  0x54   :  { %587 = vmatpush3.bf16.msra.mxu1 %v647_v12 }
  0x55   :  { %612 = vmatprep.subr.bf16.mxu1 %v739_v0  ;;  %605 = vmatpush3.bf16.msra.mxu0 %v654_v29 }
  0x56   :  { %606 = vmatprep.subr.bf16.mxu0 %v739_v0 }
  0x59   :  { %607 = vmatpush3.bf16.msra.mxu0 %v655_v30 }
 0x10e   :  { %v130_v20 = vpop.f32.mrb[0].mxu0 }
 0x10f   :  { %v131_v21 = vadd.f32 %v498_v19, %v130_v20  ;;  %v570_v22 = vpop.f32.mrb[1].mxu0 }
 0x110   :  { %v133_v23 = vpop.f32.mrb[2].mxu0 }
 0x111   :  { %v134_v24 = vadd.f32 %v498_v19, %v133_v23  ;;  %v571_v25 = vpop.f32.mrb[3].mxu0  ;;  %v137_v26 = vmax.f32 %v131_v21, 0.0 }
 0x113   :  { %v138_v27 = vmax.f32 %v134_v24, 0.0 }
 0x115   :  { %v139_v28 = vpack.c.bf16 %v138_v27, %v137_v26 }
 0x117   :  { %589 = vmatmul.mubr.bf16.vlgmr.msra.gmra.mrb[0].mxu1 %v139_v28 }
 0x118   :  { %628 = vmatprep.mubr.msk.bf16.mxu1 %vm740_vm0, %v739_v0  ;;  %613 = vmatpush3.bf16.msra.mxu1 %v656_v31 }
 0x119   :  { %614 = vmatprep.subr.bf16.mxu1 %v739_v0 }
 0x11c   :  { %615 = vmatpush3.bf16.msra.mxu1 %v657_v32 }
 0x11d   :  { %616 = vmatprep.subr.bf16.mxu1 %v739_v0 }
 0x120   :  { %617 = vmatpush3.bf16.msra.mxu1 %v658_v33 }
 0x121   :  { %618 = vmatprep.subr.bf16.mxu1 %v739_v0 }
 0x124   :  { %619 = vmatpush3.bf16.msra.mxu1 %v659_v34 }
 0x125   :  { %620 = vmatprep.subr.bf16.mxu1 %v739_v0 }
 0x128   :  { %621 = vmatpush3.bf16.msra.mxu1 %v660_v35 }
 0x129   :  { %622 = vmatprep.subr.bf16.mxu1 %v739_v0 }
 0x12c   :  { %623 = vmatpush3.bf16.msra.mxu1 %v661_v36 }
 0x12d   :  { %624 = vmatprep.subr.bf16.mxu1 %v739_v0 }
 0x130   :  { %625 = vmatpush3.bf16.msra.mxu1 %v662_v47 }
 0x131   :  { %626 = vmatprep.subr.bf16.mxu1 %v739_v0 }
 0x134   :  { %627 = vmatpush3.bf16.msra.mxu1 %v663_v48 }
 0x1ea   :  { %v245_v38 = vpop.f32.mrb[0].mxu1 }
 0x1eb   :  { %v246_v39 = vadd.f32 %v501_v37, %v245_v38  ;;  %v590_v40 = vpop.f32.mrb[1].mxu1 }
 0x1ec   :  { %v248_v41 = vpop.f32.mrb[2].mxu1 }
 0x1ed   :  { %v249_v42 = vadd.f32 %v501_v37, %v248_v41  ;;  %v591_v43 = vpop.f32.mrb[3].mxu1  ;;  %v252_v44 = vmax.f32 %v246_v39, 0.0 }
 0x1ef   :  { %v253_v45 = vmax.f32 %v249_v42, 0.0 }
 0x1f1   :  { %v254_v46 = vpack.c.bf16 %v253_v45, %v252_v44 }
 0x1f3   :  { %609 = vmatmul.mubr.bf16.vlgmr.msra.gmra.mrb[4].mxu0 %v254_v46 }
 0x2c6   :  { %v360_v50 = vpop.f32.mrb[4].mxu0 }
 0x2c7   :  { %v361_v51 = vadd.f32 %v510_v49, %v360_v50  ;;  %v610_v52 = vpop.f32.mrb[5].mxu0 }
 0x2c8   :  { %v363_v53 = vpop.f32.mrb[6].mxu0 }
 0x2c9   :  { %v364_v54 = vadd.f32 %v510_v49, %v363_v53  ;;  %v611_v55 = vpop.f32.mrb[7].mxu0  ;;  %v367_v56 = vmax.f32 %v361_v51, 0.0 }
 0x2cb   :  { %v368_v57 = vmax.f32 %v364_v54, 0.0 }
 0x2cd   :  { %v369_v58 = vpack.c.bf16 %v368_v57, %v367_v56 }
 0x2cf   :  { %629 = vmatmul.mubr.bf16.vlgmr.msra.gmra.mrb[4].mxu1 %v369_v58 }
 0x3a2   :  { %v475_v60 = vpop.f32.mrb[4].mxu1 }
 0x3a3   :  { %v630_v61 = vpop.f32.mrb[5].mxu1  ;;  %v476_v63 = vadd.f32 %v519_v59, %v475_v60 }
 0x3a4   :  { %v478_v62 = vpop.f32.mrb[6].mxu1 }
 0x3a5   :  { %v479_v0 = vadd.f32 %v519_v59, %v478_v62  ;;  %v631_v1 = vpop.f32.mrb[7].mxu1 }
 0x3a7   :  { %v535_v2 = vpack.c.bf16 %v479_v0, %v476_v63 }
 0x3a9   :  { %536 = vst [vmem:[%s909_s9] sm:$0xff] %v535_v2  }
 0x3aa   :  { %496 = vsyncpa [#allocation3], 1 }
 0x3ab   :  { %497 = vsyncpa [#allocation5], 1 }

</bundles_post_ra>
